<compile_context>
chip_gen: v6e
topology: v6e:2x2x1
jax: 0.10.0
libtpu: 0.0.40
codegen_flags: <defaults>
</compile_context>

<pallas_src>
import jax
import jax.numpy as jnp
from jax.experimental import pallas as pl
from jax.experimental.pallas import tpu as pltpu


def _round_up(x: int, m: int) -> int:
    return ((x + m - 1) // m) * m


# -----------------------------------------------------------------------------
# Pallas kernel: one (row-tile, K-tile) step of  out = relu((A @ X) @ W + b)
# -----------------------------------------------------------------------------
def _gcn_layer_kernel(a_ref, x_ref, w_ref, b_ref, o_ref, acc_ref):
    k = pl.program_id(1)

    @pl.when(k == 0)
    def _():
        acc_ref[...] = jnp.zeros_like(acc_ref)

    # acc += A[row_tile, k_tile] @ X[k_tile, :]   (bf16 x bf16 -> f32 on the MXU)
    acc_ref[...] += jnp.dot(a_ref[...], x_ref[...],
                            preferred_element_type=jnp.float32)

    @pl.when(k == pl.num_programs(1) - 1)
    def _():
        h = jnp.dot(acc_ref[...].astype(w_ref.dtype), w_ref[...],
                    preferred_element_type=jnp.float32) + b_ref[...]
        o_ref[...] = jnp.maximum(h, 0.0).astype(o_ref.dtype)


def gcn_layer(a_hat, x, w, b, *, tile_m=256, tile_k=512):
    """relu((a_hat @ x) @ w + b) via a row/K-tiled Pallas kernel (bf16 in, f32 acc)."""
    n = a_hat.shape[0]
    f_in, f_out = w.shape

    # Lane-dense feature dims (x128); (8,128)-aligned node tiles; pad so no
    # rows are dropped (padded rows/cols are zero and get sliced off).
    f_in_p = _round_up(f_in, 128)
    f_out_p = _round_up(f_out, 128)
    tm = min(tile_m, _round_up(n, 8))
    tk = min(tile_k, _round_up(n, 128))
    n_m = _round_up(n, tm)
    n_k = _round_up(n, tk)

    a_p = jnp.pad(a_hat, ((0, n_m - n), (0, n_k - n))).astype(jnp.bfloat16)
    x_p = jnp.pad(x, ((0, n_k - n), (0, f_in_p - f_in))).astype(jnp.bfloat16)
    w_p = jnp.pad(w, ((0, f_in_p - f_in), (0, f_out_p - f_out))).astype(jnp.bfloat16)
    b_p = jnp.pad(b, (0, f_out_p - f_out)).reshape(1, f_out_p).astype(jnp.float32)

    grid = (n_m // tm, n_k // tk)  # (row tiles: parallel, K tiles: arbitrary, last)

    out = pl.pallas_call(
        _gcn_layer_kernel,
        out_shape=jax.ShapeDtypeStruct((n_m, f_out_p), jnp.float32),
        grid_spec=pltpu.PrefetchScalarGridSpec(
            num_scalar_prefetch=0,
            grid=grid,
            in_specs=[
                pl.BlockSpec((tm, tk), lambda i, k: (i, k)),           # Ahat tile
                pl.BlockSpec((tk, f_in_p), lambda i, k: (k, 0)),       # X K-tile
                pl.BlockSpec((f_in_p, f_out_p), lambda i, k: (0, 0)),  # full W
                pl.BlockSpec((1, f_out_p), lambda i, k: (0, 0)),       # bias
            ],
            out_specs=pl.BlockSpec((tm, f_out_p), lambda i, k: (i, 0)),
            scratch_shapes=[pltpu.VMEM((tm, f_in_p), jnp.float32)],    # f32 accumulator
        ),
        compiler_params=pltpu.CompilerParams(
            dimension_semantics=("parallel", "arbitrary")),
    )(a_p, x_p, w_p, b_p)

    return out[:n, :f_out]


# -----------------------------------------------------------------------------
# Glue: dense normalized adjacency (GCNConv gcn_norm: self-loops, edge weights,
# symmetric D^-1/2 A D^-1/2 normalization).
# -----------------------------------------------------------------------------
def build_norm_adj(edge_index, edge_weight, num_nodes):
    src = edge_index[0]
    dst = edge_index[1]
    adj = jnp.zeros((num_nodes, num_nodes), jnp.float32)
    adj = adj.at[dst, src].add(edge_weight)               # message src -> dst
    adj = adj + jnp.eye(num_nodes, dtype=jnp.float32)     # self loops, weight 1
    deg = adj.sum(axis=1)                                 # weighted in-degree
    dinv = jnp.where(deg > 0, 1.0 / jnp.sqrt(deg), 0.0)
    return dinv[:, None] * adj * dinv[None, :]


# -----------------------------------------------------------------------------
# Encoder forward:  x = relu(gc1(x)); x = dropout(x); x = relu(gc2(x))
# Dropout runs in inference mode (identity), matching training=False.
# -----------------------------------------------------------------------------
def encoder_forward(params, x, edge_index, edge_weight):
    n = x.shape[0]
    a_hat = build_norm_adj(edge_index, edge_weight, n)
    h = gcn_layer(a_hat, x, params["w1"], params["b1"])
    h = gcn_layer(a_hat, h, params["w2"], params["b2"])
    return h


def init_params(key, nfeat, nhid):
    k1, k2 = jax.random.split(key)
    lim1 = (6.0 / (nfeat + nhid)) ** 0.5
    lim2 = (6.0 / (nhid + nhid)) ** 0.5
    return {
        "w1": jax.random.uniform(k1, (nfeat, nhid), jnp.float32, -lim1, lim1),
        "b1": jnp.zeros((nhid,), jnp.float32),
        "w2": jax.random.uniform(k2, (nhid, nhid), jnp.float32, -lim2, lim2),
        "b2": jnp.zeros((nhid,), jnp.float32),
    }


# Reference with the same bf16-operand / f32-accumulation math as the kernel.
def _reference_gcn(a_hat, x, w, b):
    ax = jnp.dot(a_hat.astype(jnp.bfloat16), x.astype(jnp.bfloat16),
                 preferred_element_type=jnp.float32)
    h = jnp.dot(ax.astype(jnp.bfloat16), w.astype(jnp.bfloat16),
                preferred_element_type=jnp.float32) + b
    return jnp.maximum(h, 0.0)


if __name__ == "__main__":
    N, NFEAT, NHID, E = 16, 16, 32, 48

    key = jax.random.PRNGKey(0)
    kx, ke, kw, kp = jax.random.split(key, 4)

    x = jax.random.normal(kx, (N, NFEAT), jnp.float32)
    edge_index = jax.random.randint(ke, (2, E), 0, N, dtype=jnp.int32)
    edge_weight = jax.random.uniform(kw, (E,), jnp.float32, 0.1, 1.0)

    params = init_params(kp, NFEAT, NHID)

    out = jax.jit(encoder_forward)(params, x, edge_index, edge_weight)
    out = jax.block_until_ready(out)
    assert out.shape == (N, NHID)

    # Check against bf16-matched reference (same math as the kernel path).
    a_hat = build_norm_adj(edge_index, edge_weight, N)
    ref = _reference_gcn(a_hat, x, params["w1"], params["b1"])
    ref = _reference_gcn(a_hat, ref, params["w2"], params["b2"])
    assert jnp.allclose(out, ref, atol=1e-3, rtol=1e-3), float(
        jnp.max(jnp.abs(out - ref)))

    # Coarse sanity vs. pure-f32 math (bf16 operand rounding tolerance).
    ref32 = jnp.maximum(a_hat @ (x @ params["w1"]) + params["b1"], 0.0)
    ref32 = jnp.maximum(a_hat @ (ref32 @ params["w2"]) + params["b2"], 0.0)
    assert jnp.allclose(out, ref32, atol=1e-1, rtol=1e-1)

    print("KERNEL_OK")
</pallas_src>

<mosaic_0001>
module attributes {stable_mosaic.version = 11 : i64} {
  func.func private @main(%arg0: i32) attributes {dimension_semantics = [#tpu.dimension_semantics<core_parallel>], iteration_bounds = array<i64: 2>, tpu.core_type = #tpu.core_type<sc_scalar_subcore>, window_params = []} {
    return
  }
}

module attributes {stable_mosaic.version = 11 : i64} {
  func.func private @main(%arg0: i32) attributes {dimension_semantics = [#tpu.dimension_semantics<core_parallel>], iteration_bounds = array<i64: 2>, tpu.core_type = #tpu.core_type<sc_scalar_subcore>, window_params = []} {
    return
  }
}

module attributes {stable_mosaic.version = 11 : i64} {
  func.func @_gcn_layer_kernel(%arg0: i32, %arg1: i32, %arg2: memref<16x128xbf16, #tpu.memory_space<vmem>>, %arg3: memref<128x128xbf16, #tpu.memory_space<vmem>>, %arg4: memref<128x128xbf16, #tpu.memory_space<vmem>>, %arg5: memref<1x128xf32, #tpu.memory_space<vmem>>, %arg6: memref<16x128xf32, #tpu.memory_space<vmem>>, %arg7: memref<16x128xf32, #tpu.memory_space<vmem>>) attributes {dimension_semantics = [#tpu.dimension_semantics<parallel>, #tpu.dimension_semantics<arbitrary>], iteration_bounds = array<i64: 1, 1>, scalar_prefetch = 0 : i64, scratch_operands = 1 : i64, tpu.core_type = #tpu.core_type<tc>, window_params = [{transform_indices = @transform_0, window_bounds = array<i64: 16, 128>}, {transform_indices = @transform_1, window_bounds = array<i64: 128, 128>}, {pipeline_mode = #tpu.pipeline_mode<synchronous>, transform_indices = @transform_2, window_bounds = array<i64: 128, 128>}, {pipeline_mode = #tpu.pipeline_mode<synchronous>, transform_indices = @transform_3, window_bounds = array<i64: 1, 128>}, {transform_indices = @transform_4, window_bounds = array<i64: 16, 128>}]} {
    %c0_i32 = arith.constant 0 : i32
    %0 = arith.cmpi eq, %arg1, %c0_i32 : i32
    %1 = arith.extui %0 : i1 to i32
    %c0_i32_0 = arith.constant 0 : i32
    %2 = arith.cmpi ne, %1, %c0_i32_0 : i32
    scf.if %2 {
      %cst_10 = arith.constant 0.000000e+00 : f32
      %12 = vector.broadcast %cst_10 : f32 to vector<16x128xf32>
      %c0_11 = arith.constant 0 : index
      %c0_12 = arith.constant 0 : index
      %13 = vector.load %arg7[%c0_11, %c0_12] : memref<16x128xf32, #tpu.memory_space<vmem>>, vector<16x128xf32>
      tpu.vector_store %arg7[%c0_11, %c0_12], %12 {strides = array<i32>} : memref<16x128xf32, #tpu.memory_space<vmem>>, vector<16x128xf32>,
    } else {
    }
    %c0 = arith.constant 0 : index
    %c0_1 = arith.constant 0 : index
    %3 = vector.load %arg7[%c0, %c0_1] : memref<16x128xf32, #tpu.memory_space<vmem>>, vector<16x128xf32>
    %c0_2 = arith.constant 0 : index
    %c0_3 = arith.constant 0 : index
    %4 = vector.load %arg2[%c0_2, %c0_3] : memref<16x128xbf16, #tpu.memory_space<vmem>>, vector<16x128xbf16>
    %c0_4 = arith.constant 0 : index
    %c0_5 = arith.constant 0 : index
    %5 = vector.load %arg3[%c0_4, %c0_5] : memref<128x128xbf16, #tpu.memory_space<vmem>>, vector<128x128xbf16>
    %cst = arith.constant dense<0.000000e+00> : vector<16x128xf32>
    %6 = tpu.matmul %4, %5, %cst {dimension_numbers = #tpu.dot_dimension_numbers<[1], [0], [0], [1], [0, 0, 1, 1], [], []>} : vector<16x128xbf16>, vector<128x128xbf16>, vector<16x128xf32> -> vector<16x128xf32>
    %7 = arith.addf %3, %6 : vector<16x128xf32>
    %c0_6 = arith.constant 0 : index
    %c0_7 = arith.constant 0 : index
    %8 = vector.load %arg7[%c0_6, %c0_7] : memref<16x128xf32, #tpu.memory_space<vmem>>, vector<16x128xf32>
    tpu.vector_store %arg7[%c0_6, %c0_7], %7 {strides = array<i32>} : memref<16x128xf32, #tpu.memory_space<vmem>>, vector<16x128xf32>,
    %c0_i32_8 = arith.constant 0 : i32
    %9 = arith.cmpi eq, %arg1, %c0_i32_8 : i32
    %10 = arith.extui %9 : i1 to i32
    %c0_i32_9 = arith.constant 0 : i32
    %11 = arith.cmpi ne, %10, %c0_i32_9 : i32
    scf.if %11 {
      %c0_10 = arith.constant 0 : index
      %c0_11 = arith.constant 0 : index
      %12 = vector.load %arg7[%c0_10, %c0_11] : memref<16x128xf32, #tpu.memory_space<vmem>>, vector<16x128xf32>
      %13 = arith.truncf %12 : vector<16x128xf32> to vector<16x128xbf16>
      %c0_12 = arith.constant 0 : index
      %c0_13 = arith.constant 0 : index
      %14 = vector.load %arg4[%c0_12, %c0_13] : memref<128x128xbf16, #tpu.memory_space<vmem>>, vector<128x128xbf16>
      %cst_14 = arith.constant dense<0.000000e+00> : vector<16x128xf32>
      %15 = tpu.matmul %13, %14, %cst_14 {dimension_numbers = #tpu.dot_dimension_numbers<[1], [0], [0], [1], [0, 0, 1, 1], [], []>} : vector<16x128xbf16>, vector<128x128xbf16>, vector<16x128xf32> -> vector<16x128xf32>
      %c0_15 = arith.constant 0 : index
      %c0_16 = arith.constant 0 : index
      %16 = vector.load %arg5[%c0_15, %c0_16] : memref<1x128xf32, #tpu.memory_space<vmem>>, vector<1x128xf32>
      %17 = vector.broadcast %16 : vector<1x128xf32> to vector<16x128xf32>
      %18 = arith.addf %15, %17 : vector<16x128xf32>
      %cst_17 = arith.constant 0.000000e+00 : f32
      %19 = vector.broadcast %cst_17 : f32 to vector<16x128xf32>
      %20 = arith.maximumf %18, %19 : vector<16x128xf32>
      %c0_18 = arith.constant 0 : index
      %c0_19 = arith.constant 0 : index
      %21 = vector.load %arg6[%c0_18, %c0_19] : memref<16x128xf32, #tpu.memory_space<vmem>>, vector<16x128xf32>
      tpu.vector_store %arg6[%c0_18, %c0_19], %20 {strides = array<i32>} : memref<16x128xf32, #tpu.memory_space<vmem>>, vector<16x128xf32>,
    } else {
    }
    return
  }
  func.func @transform_0(%arg0: i32, %arg1: i32) -> (i32, i32) {
    %c0_i32 = arith.constant 0 : i32
    return %arg0, %arg1 : i32, i32
  }
  func.func @transform_1(%arg0: i32, %arg1: i32) -> (i32, i32) {
    %c0_i32 = arith.constant 0 : i32
    %c0_i32_0 = arith.constant 0 : i32
    return %arg1, %c0_i32 : i32, i32
  }
  func.func @transform_2(%arg0: i32, %arg1: i32) -> (i32, i32) {
    %c0_i32 = arith.constant 0 : i32
    %c0_i32_0 = arith.constant 0 : i32
    %c0_i32_1 = arith.constant 0 : i32
    return %c0_i32, %c0_i32_0 : i32, i32
  }
  func.func @transform_3(%arg0: i32, %arg1: i32) -> (i32, i32) {
    %c0_i32 = arith.constant 0 : i32
    %c0_i32_0 = arith.constant 0 : i32
    %c0_i32_1 = arith.constant 0 : i32
    return %c0_i32, %c0_i32_0 : i32, i32
  }
  func.func @transform_4(%arg0: i32, %arg1: i32) -> (i32, i32) {
    %c0_i32 = arith.constant 0 : i32
    %c0_i32_0 = arith.constant 0 : i32
    return %arg0, %c0_i32 : i32, i32
  }
}

module attributes {stable_mosaic.version = 11 : i64} {
  func.func @_gcn_layer_kernel(%arg0: i32, %arg1: i32, %arg2: memref<16x128xbf16, #tpu.memory_space<vmem>>, %arg3: memref<128x128xbf16, #tpu.memory_space<vmem>>, %arg4: memref<128x128xbf16, #tpu.memory_space<vmem>>, %arg5: memref<1x128xf32, #tpu.memory_space<vmem>>, %arg6: memref<16x128xf32, #tpu.memory_space<vmem>>, %arg7: memref<16x128xf32, #tpu.memory_space<vmem>>) attributes {dimension_semantics = [#tpu.dimension_semantics<parallel>, #tpu.dimension_semantics<arbitrary>], iteration_bounds = array<i64: 1, 1>, scalar_prefetch = 0 : i64, scratch_operands = 1 : i64, tpu.core_type = #tpu.core_type<tc>, window_params = [{transform_indices = @transform_0, window_bounds = array<i64: 16, 128>}, {transform_indices = @transform_1, window_bounds = array<i64: 128, 128>}, {pipeline_mode = #tpu.pipeline_mode<synchronous>, transform_indices = @transform_2, window_bounds = array<i64: 128, 128>}, {pipeline_mode = #tpu.pipeline_mode<synchronous>, transform_indices = @transform_3, window_bounds = array<i64: 1, 128>}, {transform_indices = @transform_4, window_bounds = array<i64: 16, 128>}]} {
    %c0_i32 = arith.constant 0 : i32
    %0 = arith.cmpi eq, %arg1, %c0_i32 : i32
    %1 = arith.extui %0 : i1 to i32
    %c0_i32_0 = arith.constant 0 : i32
    %2 = arith.cmpi ne, %1, %c0_i32_0 : i32
    scf.if %2 {
      %cst_10 = arith.constant 0.000000e+00 : f32
      %12 = vector.broadcast %cst_10 : f32 to vector<16x128xf32>
      %c0_11 = arith.constant 0 : index
      %c0_12 = arith.constant 0 : index
      %13 = vector.load %arg7[%c0_11, %c0_12] : memref<16x128xf32, #tpu.memory_space<vmem>>, vector<16x128xf32>
      tpu.vector_store %arg7[%c0_11, %c0_12], %12 {strides = array<i32>} : memref<16x128xf32, #tpu.memory_space<vmem>>, vector<16x128xf32>,
    } else {
    }
    %c0 = arith.constant 0 : index
    %c0_1 = arith.constant 0 : index
    %3 = vector.load %arg7[%c0, %c0_1] : memref<16x128xf32, #tpu.memory_space<vmem>>, vector<16x128xf32>
    %c0_2 = arith.constant 0 : index
    %c0_3 = arith.constant 0 : index
    %4 = vector.load %arg2[%c0_2, %c0_3] : memref<16x128xbf16, #tpu.memory_space<vmem>>, vector<16x128xbf16>
    %c0_4 = arith.constant 0 : index
    %c0_5 = arith.constant 0 : index
    %5 = vector.load %arg3[%c0_4, %c0_5] : memref<128x128xbf16, #tpu.memory_space<vmem>>, vector<128x128xbf16>
    %cst = arith.constant dense<0.000000e+00> : vector<16x128xf32>
    %6 = tpu.matmul %4, %5, %cst {dimension_numbers = #tpu.dot_dimension_numbers<[1], [0], [0], [1], [0, 0, 1, 1], [], []>} : vector<16x128xbf16>, vector<128x128xbf16>, vector<16x128xf32> -> vector<16x128xf32>
    %7 = arith.addf %3, %6 : vector<16x128xf32>
    %c0_6 = arith.constant 0 : index
    %c0_7 = arith.constant 0 : index
    %8 = vector.load %arg7[%c0_6, %c0_7] : memref<16x128xf32, #tpu.memory_space<vmem>>, vector<16x128xf32>
    tpu.vector_store %arg7[%c0_6, %c0_7], %7 {strides = array<i32>} : memref<16x128xf32, #tpu.memory_space<vmem>>, vector<16x128xf32>,
    %c0_i32_8 = arith.constant 0 : i32
    %9 = arith.cmpi eq, %arg1, %c0_i32_8 : i32
    %10 = arith.extui %9 : i1 to i32
    %c0_i32_9 = arith.constant 0 : i32
    %11 = arith.cmpi ne, %10, %c0_i32_9 : i32
    scf.if %11 {
      %c0_10 = arith.constant 0 : index
      %c0_11 = arith.constant 0 : index
      %12 = vector.load %arg7[%c0_10, %c0_11] : memref<16x128xf32, #tpu.memory_space<vmem>>, vector<16x128xf32>
      %13 = arith.truncf %12 : vector<16x128xf32> to vector<16x128xbf16>
      %c0_12 = arith.constant 0 : index
      %c0_13 = arith.constant 0 : index
      %14 = vector.load %arg4[%c0_12, %c0_13] : memref<128x128xbf16, #tpu.memory_space<vmem>>, vector<128x128xbf16>
      %cst_14 = arith.constant dense<0.000000e+00> : vector<16x128xf32>
      %15 = tpu.matmul %13, %14, %cst_14 {dimension_numbers = #tpu.dot_dimension_numbers<[1], [0], [0], [1], [0, 0, 1, 1], [], []>} : vector<16x128xbf16>, vector<128x128xbf16>, vector<16x128xf32> -> vector<16x128xf32>
      %c0_15 = arith.constant 0 : index
      %c0_16 = arith.constant 0 : index
      %16 = vector.load %arg5[%c0_15, %c0_16] : memref<1x128xf32, #tpu.memory_space<vmem>>, vector<1x128xf32>
      %17 = vector.broadcast %16 : vector<1x128xf32> to vector<16x128xf32>
      %18 = arith.addf %15, %17 : vector<16x128xf32>
      %cst_17 = arith.constant 0.000000e+00 : f32
      %19 = vector.broadcast %cst_17 : f32 to vector<16x128xf32>
      %20 = arith.maximumf %18, %19 : vector<16x128xf32>
      %c0_18 = arith.constant 0 : index
      %c0_19 = arith.constant 0 : index
      %21 = vector.load %arg6[%c0_18, %c0_19] : memref<16x128xf32, #tpu.memory_space<vmem>>, vector<16x128xf32>
      tpu.vector_store %arg6[%c0_18, %c0_19], %20 {strides = array<i32>} : memref<16x128xf32, #tpu.memory_space<vmem>>, vector<16x128xf32>,
    } else {
    }
    return
  }
  func.func @transform_0(%arg0: i32, %arg1: i32) -> (i32, i32) {
    %c0_i32 = arith.constant 0 : i32
    return %arg0, %arg1 : i32, i32
  }
  func.func @transform_1(%arg0: i32, %arg1: i32) -> (i32, i32) {
    %c0_i32 = arith.constant 0 : i32
    %c0_i32_0 = arith.constant 0 : i32
    return %arg1, %c0_i32 : i32, i32
  }
  func.func @transform_2(%arg0: i32, %arg1: i32) -> (i32, i32) {
    %c0_i32 = arith.constant 0 : i32
    %c0_i32_0 = arith.constant 0 : i32
    %c0_i32_1 = arith.constant 0 : i32
    return %c0_i32, %c0_i32_0 : i32, i32
  }
  func.func @transform_3(%arg0: i32, %arg1: i32) -> (i32, i32) {
    %c0_i32 = arith.constant 0 : i32
    %c0_i32_0 = arith.constant 0 : i32
    %c0_i32_1 = arith.constant 0 : i32
    return %c0_i32, %c0_i32_0 : i32, i32
  }
  func.func @transform_4(%arg0: i32, %arg1: i32) -> (i32, i32) {
    %c0_i32 = arith.constant 0 : i32
    %c0_i32_0 = arith.constant 0 : i32
    return %arg0, %c0_i32 : i32, i32
  }
}

</mosaic_0001>

<bundles_post_ra>
// kernel: encoder_forward.2
= control target key start
LH: loop header
LB: loop body
LE: loop exit
PB: predicated region body
PF: predicated region fallthrough
CT: control target
= control target key end

     0   :  { %v364_v0 = vmov 0.0   ;;  %vm365_vm0 = vmmov 0   ;;  %s451_s1 = inlined_call_operand.vmem [shape: bf16[128,128], index: 1, kind: input, shape index: {}]   ;;  %s452_s2 = inlined_call_operand.vmem [shape: bf16[128,128], index: 2, kind: input, shape index: {}]   ;;  %s453_s0 = inlined_call_operand.vmem [shape: bf16[16,128], index: 0, kind: input, shape index: {}]   ;;  %s454_s3 = inlined_call_operand.vmem [shape: f32[1,128], index: 3, kind: input, shape index: {}]   ;;  %s455_s4 = inlined_call_operand.vmem [shape: f32[16,128], index: 4, kind: output, shape index: {}]  }
   0x1   :  { %305 = vmatprep.subr.bf16.mxu0 %v364_v0  ;;  %v347_v1 = vld [vmem:[%s451_s1 + $0x38] sm:$0xff]   ;;  %321 = vmatprep.mubr.msk.bf16.mxu0 %vm365_vm0, %v364_v0  ;;  %v348_v2 = vld [vmem:[%s451_s1 + $0x30] sm:$0xff]   ;;  %v349_v3 = vld [vmem:[%s451_s1 + $0x28] sm:$0xff]  }
   0x2   :  { %325 = vmatprep.subr.bf16.mxu1 %v364_v0  ;;  %341 = vmatprep.mubr.msk.bf16.mxu1 %vm365_vm0, %v364_v0  ;;  %v356_v4 = vld [vmem:[%s452_s2 + $0x38] sm:$0xff]   ;;  %v350_v5 = vld [vmem:[%s451_s1 + $0x20] sm:$0xff]   ;;  %v357_v6 = vld [vmem:[%s452_s2 + $0x30] sm:$0xff]  }
   0x3   :  { %306 = vmatpush3.bf16.msra.mxu0 %v347_v1  ;;  %326 = vmatpush3.bf16.msra.mxu1 %v356_v4  ;;  %v351_v7 = vld [vmem:[%s451_s1 + $0x18] sm:$0xff]   ;;  %v358_v8 = vld [vmem:[%s452_s2 + $0x28] sm:$0xff]   ;;  %v352_v9 = vld [vmem:[%s451_s1 + $0x10] sm:$0xff]  }
   0x4   :  { %307 = vmatprep.subr.bf16.mxu0 %v364_v0  ;;  %327 = vmatprep.subr.bf16.mxu1 %v364_v0  ;;  %v359_v10 = vld [vmem:[%s452_s2 + $0x20] sm:$0xff]   ;;  %v353_v11 = vld [vmem:[%s451_s1 + $0x8] sm:$0xff]   ;;  %v360_v12 = vld [vmem:[%s452_s2 + $0x18] sm:$0xff]  }
   0x5   :  { %v354_v13 = vld [vmem:[%s451_s1] sm:$0xff]   ;;  %v361_v14 = vld [vmem:[%s452_s2 + $0x10] sm:$0xff]   ;;  %v362_v16 = vld [vmem:[%s452_s2 + $0x8] sm:$0xff]  }
   0x6   :  { %v355_v15 = vld [vmem:[%s453_s0] sm:$0xff]  }
   0x7   :  { %308 = vmatpush3.bf16.msra.mxu0 %v348_v2  ;;  %328 = vmatpush3.bf16.msra.mxu1 %v357_v6  ;;  %v363_v17 = vld [vmem:[%s452_s2] sm:$0xff]  }
   0x8   :  { %309 = vmatprep.subr.bf16.mxu0 %v364_v0  ;;  %329 = vmatprep.subr.bf16.mxu1 %v364_v0  ;;  %v278_v23 = vld [vmem:[%s454_s3] ss:$0 sm:$0xff] }
   0xb   :  { %310 = vmatpush3.bf16.msra.mxu0 %v349_v3  ;;  %330 = vmatpush3.bf16.msra.mxu1 %v358_v8 }
   0xc   :  { %311 = vmatprep.subr.bf16.mxu0 %v364_v0  ;;  %331 = vmatprep.subr.bf16.mxu1 %v364_v0 }
   0xf   :  { %312 = vmatpush3.bf16.msra.mxu0 %v350_v5  ;;  %332 = vmatpush3.bf16.msra.mxu1 %v359_v10 }
  0x10   :  { %313 = vmatprep.subr.bf16.mxu0 %v364_v0  ;;  %333 = vmatprep.subr.bf16.mxu1 %v364_v0 }
  0x13   :  { %314 = vmatpush3.bf16.msra.mxu0 %v351_v7  ;;  %334 = vmatpush3.bf16.msra.mxu1 %v360_v12 }
  0x14   :  { %315 = vmatprep.subr.bf16.mxu0 %v364_v0  ;;  %335 = vmatprep.subr.bf16.mxu1 %v364_v0 }
  0x17   :  { %316 = vmatpush3.bf16.msra.mxu0 %v352_v9  ;;  %336 = vmatpush3.bf16.msra.mxu1 %v361_v14 }
  0x18   :  { %317 = vmatprep.subr.bf16.mxu0 %v364_v0  ;;  %337 = vmatprep.subr.bf16.mxu1 %v364_v0 }
  0x1b   :  { %318 = vmatpush3.bf16.msra.mxu0 %v353_v11  ;;  %338 = vmatpush3.bf16.msra.mxu1 %v362_v16 }
  0x1c   :  { %319 = vmatprep.subr.bf16.mxu0 %v364_v0  ;;  %339 = vmatprep.subr.bf16.mxu1 %v364_v0 }
  0x1f   :  { %320 = vmatpush3.bf16.msra.mxu0 %v354_v13  ;;  %340 = vmatpush3.bf16.msra.mxu1 %v363_v17 }
  0x22   :  { %322 = vmatmul.mubr.bf16.vlgmr.msra.gmra.mxu0 %v355_v15 }
  0xe2   :  { %v132_v18 = vpop.f32.mrf.mxu0 }
  0xe4   :  { %v323_v19 = vpop.f32.mrf.mxu0 }
  0xe6   :  { %v135_v20 = vpop.f32.mrf.mxu0 }
  0xe7   :  { %v148_v21 = vpack.c.bf16 %v135_v20, %v132_v18 }
  0xe8   :  { %v324_v22 = vpop.f32.mrf.mxu0 }
  0xe9   :  { %342 = vmatmul.mubr.bf16.vlgmr.msra.gmra.mxu1 %v148_v21 }
 0x1a9   :  { %v254_v24 = vpop.f32.mrf.mxu1 }
 0x1aa   :  { %v255_v25 = vadd.f32 %v278_v23, %v254_v24 }
 0x1ab   :  { %v343_v26 = vpop.f32.mrf.mxu1 }
 0x1ac   :  { %v261_v27 = vmax.f32 %v255_v25, 0.0 }
 0x1ad   :  { %v257_v28 = vpop.f32.mrf.mxu1 }
 0x1ae   :  { %263 = vst [vmem:[%s455_s4] sm:$0xff] %v261_v27  ;;  %v258_v29 = vadd.f32 %v278_v23, %v257_v28 }
 0x1af   :  { %v344_v30 = vpop.f32.mrf.mxu1 }
 0x1b0   :  { %v262_v31 = vmax.f32 %v258_v29, 0.0 }
 0x1b2   :  { %264 = vst [vmem:[%s455_s4 + $0x8] sm:$0xff] %v262_v31 }

// kernel: encoder_forward.3
= control target key start
LH: loop header
LB: loop body
LE: loop exit
PB: predicated region body
PF: predicated region fallthrough
CT: control target
= control target key end

     0   :  { %v402_v1 = vmov 0.0   ;;  %vm403_vm0 = vmmov 0   ;;  %s489_s0 = inlined_call_operand.vmem [shape: bf16[16,128], index: 0, kind: input, shape index: {}]   ;;  %s490_s1 = inlined_call_operand.vmem [shape: bf16[128,128], index: 1, kind: input, shape index: {}]   ;;  %s491_s2 = inlined_call_operand.vmem [shape: bf16[128,128], index: 2, kind: input, shape index: {}]   ;;  %s492_s3 = inlined_call_operand.vmem [shape: f32[1,128], index: 3, kind: input, shape index: {}]   ;;  %s493_s4 = inlined_call_operand.hbm [shape: f32[16,128], index: 4, kind: output, shape index: {}]  }
   0x1   :  { %v363_v0 = vld [vmem:[%s490_s1 + $0x38] sm:$0xff]   ;;  %318 = vmatprep.subr.bf16.mxu0 %v402_v1  ;;  %338 = vmatprep.subr.bf16.mxu1 %v402_v1  ;;  %v364_v2 = vld [vmem:[%s490_s1 + $0x30] sm:$0xff]   ;;  %v365_v3 = vld [vmem:[%s490_s1 + $0x28] sm:$0xff]  }
   0x2   :  { %319 = vmatpush3.bf16.msra.mxu0 %v363_v0  ;;  %334 = vmatprep.mubr.msk.bf16.mxu0 %vm403_vm0, %v402_v1  ;;  %v372_v4 = vld [vmem:[%s491_s2 + $0x38] sm:$0xff]   ;;  %v366_v5 = vld [vmem:[%s490_s1 + $0x20] sm:$0xff]   ;;  %v373_v6 = vld [vmem:[%s491_s2 + $0x30] sm:$0xff]  }
   0x3   :  { %320 = vmatprep.subr.bf16.mxu0 %v402_v1  ;;  %354 = vmatprep.mubr.msk.bf16.mxu1 %vm403_vm0, %v402_v1  ;;  %v367_v7 = vld [vmem:[%s490_s1 + $0x18] sm:$0xff]   ;;  %v374_v8 = vld [vmem:[%s491_s2 + $0x28] sm:$0xff]  }
   0x4   :  { %339 = vmatpush3.bf16.msra.mxu1 %v372_v4 }
   0x5   :  { %340 = vmatprep.subr.bf16.mxu1 %v402_v1 }
   0x6   :  { %321 = vmatpush3.bf16.msra.mxu0 %v364_v2 }
   0x7   :  { %322 = vmatprep.subr.bf16.mxu0 %v402_v1 }
   0x8   :  { %341 = vmatpush3.bf16.msra.mxu1 %v373_v6 }
   0x9   :  { %342 = vmatprep.subr.bf16.mxu1 %v402_v1 }
   0xa   :  { %323 = vmatpush3.bf16.msra.mxu0 %v365_v3 }
   0xb   :  { %324 = vmatprep.subr.bf16.mxu0 %v402_v1 }
   0xe   :  { %325 = vmatpush3.bf16.msra.mxu0 %v366_v5 }
   0xf   :  { %326 = vmatprep.subr.bf16.mxu0 %v402_v1 }
  0x10   :  { %9 = vsyncpa [#allocation4], 0  ;;  %v368_v9 = vld [vmem:[%s490_s1 + $0x10] sm:$0xff]   ;;  %343 = vmatpush3.bf16.msra.mxu1 %v374_v8  ;;  %v375_v10 = vld [vmem:[%s491_s2 + $0x20] sm:$0xff]   ;;  %s404_s23 = smov [#allocation3]  }
  0x11   :  { %344 = vmatprep.subr.bf16.mxu1 %v402_v1  ;;  %v369_v11 = vld [vmem:[%s490_s1 + $0x8] sm:$0xff]   ;;  %v376_v12 = vld [vmem:[%s491_s2 + $0x18] sm:$0xff]   ;;  %v370_v13 = vld [vmem:[%s490_s1] sm:$0xff]   ;;  %s271_s24 = sshll.u32 %s404_s23, 4  ;;  %s272_s24 = int_to_ptr.vmem [resolvable:$true] %s271_s24 }
  0x12   :  { %327 = vmatpush3.bf16.msra.mxu0 %v367_v7  ;;  %v377_v14 = vld [vmem:[%s491_s2 + $0x10] sm:$0xff]   ;;  %v371_v15 = vld [vmem:[%s489_s0] sm:$0xff]   ;;  %v378_v16 = vld [vmem:[%s491_s2 + $0x8] sm:$0xff]   ;;  %p385_p1 = scmp.lt.s32.totalorder %s272_s24, %s272_s24 }
  0x13   :  { %328 = vmatprep.subr.bf16.mxu0 %v402_v1  ;;  %v379_v17 = vld [vmem:[%s491_s2] sm:$0xff]   ;;  %s380_s2 = scalar_lea.vmem %s272_s24, 256 }
  0x14   :  { %345 = vmatpush3.bf16.msra.mxu1 %v375_v10  ;;  %v291_v23 = vld [vmem:[%s492_s3] ss:$0 sm:$0xff]  ;;  %p381_p0 = scmp.ne.s32.totalorder %s272_s24, %s380_s2  ;;  %p386_p2 = scmp.lt.s32.totalorder %s380_s2, %s380_s2 }
  0x15   :  { %346 = vmatprep.subr.bf16.mxu1 %v402_v1 }
  0x16   :  { %329 = vmatpush3.bf16.msra.mxu0 %v368_v9  ;;  %p387_p3 = por %p386_p2, %p385_p1 }
  0x17   :  { %330 = vmatprep.subr.bf16.mxu0 %v402_v1 }
  0x18   :  { %347 = vmatpush3.bf16.msra.mxu1 %v376_v12  ;;  %p388_p4 = pnand %p387_p3, %p381_p0 }
  0x19   :  { %348 = vmatprep.subr.bf16.mxu1 %v402_v1 }
  0x1a   :  { %331 = vmatpush3.bf16.msra.mxu0 %v369_v11 }
  0x1b   :  { %332 = vmatprep.subr.bf16.mxu0 %v402_v1 }
  0x1c   :  { %349 = vmatpush3.bf16.msra.mxu1 %v377_v14 }
  0x1d   :  { %350 = vmatprep.subr.bf16.mxu1 %v402_v1 }
  0x1e   :  { %333 = vmatpush3.bf16.msra.mxu0 %v370_v13 }
  0x20   :  { %351 = vmatpush3.bf16.msra.mxu1 %v378_v16 }
  0x21   :  { %335 = vmatmul.mubr.bf16.vlgmr.msra.gmra.mxu0 %v371_v15  ;;  %352 = vmatprep.subr.bf16.mxu1 %v402_v1 }
  0x24   :  { %353 = vmatpush3.bf16.msra.mxu1 %v379_v17 }
  0xe1   :  { %v133_v18 = vpop.f32.mrf.mxu0 }
  0xe3   :  { %v336_v19 = vpop.f32.mrf.mxu0 }
  0xe5   :  { %v136_v20 = vpop.f32.mrf.mxu0 }
  0xe6   :  { %v149_v21 = vpack.c.bf16 %v136_v20, %v133_v18 }
  0xe7   :  { %v337_v22 = vpop.f32.mrf.mxu0 }
  0xe8   :  { %355 = vmatmul.mubr.bf16.vlgmr.msra.gmra.mxu1 %v149_v21 }
 0x1a8   :  { %v255_v24 = vpop.f32.mrf.mxu1 }
 0x1a9   :  { %v256_v25 = vadd.f32 %v291_v23, %v255_v24 }
 0x1aa   :  { %v356_v26 = vpop.f32.mrf.mxu1 }
 0x1ab   :  { %v262_v27 = vmax.f32 %v256_v25, 0.0 }
 0x1ac   :  { %v258_v28 = vpop.f32.mrf.mxu1 }
 0x1ad   :  { %264 = vst [vmem:[#allocation3] sm:$0xff] %v262_v27  ;;  %v259_v29 = vadd.f32 %v291_v23, %v258_v28 }
 0x1ae   :  { %v357_v30 = vpop.f32.mrf.mxu1 }
 0x1af   :  { %v263_v31 = vmax.f32 %v259_v29, 0.0 }
 0x1b1   :  { %265 = vst [vmem:[#allocation3 + $0x8] sm:$0xff] %v263_v31 }
 0x1b2   :  { %391 = shalt.err (!%p388_p4)
}
 0x1b3   :  { %s405_s3 = smov 128   ;;  %s406_s25 = smov 8  }
 0x1b4   :  { %277 = dma.vmem_to_hbm [thread:$0]  %s272_s24, 256, %s493_s4, [#allocation4], %s405_s3, %s405_s3, %s406_s25  }
 0x1b5   :  { %400 = dma.done.wait [#allocation4], 256  }
 0x1b6   :  { %401 = vsyncadd [#allocation4], 4294967040 }
 0x1b7   :  { %281 = vsyncpa [#allocation4], 1 }

</bundles_post_ra>
